<compile_context>
chip_gen: v7x
topology: tpu7x:2x2x1
jax: 0.10.0
libtpu: 0.0.40
codegen_flags: <defaults>
</compile_context>

<pallas_src>
import math
import functools

import jax
import jax.numpy as jnp
from jax import lax
from jax.experimental import pallas as pl
from jax.experimental.pallas import tpu as pltpu

D_K = D_V = 64
SCALE = 1.0 / math.sqrt(D_K)  # = 0.125 exactly (power of two, so exact fold)


def _sdpa_kernel(q_ref, k_ref, v_ref, mask_ref, ctx_ref, attn_ref=None, *,
                 compute_dtype=jnp.bfloat16):
    """One grid step: an (hb, tq, .) slab of fused (batch*head) items.

    q_ref    : (hb, tq, d_k) f32      k_ref : (hb, Lk, d_k) f32
    v_ref    : (hb, Lk, d_v) f32      mask  : (hb, tq, Lk)  int8 (nonzero == masked)
    ctx_ref  : (hb, tq, d_v) f32      attn  : (hb, tq, Lk)  f32  (optional)
    """
    # Fold 1/sqrt(d_k) into Q (scales Lq*d_k elements instead of Lq*Lk).
    q = q_ref[...] * jnp.float32(SCALE)
    k = k_ref[...]
    v = v_ref[...]

    # scores = Q @ K^T as a contraction over the last dims -> MXU directly,
    # no XLU transpose of K.
    scores = lax.dot_general(
        q, k, dimension_numbers=(((2,), (2,)), ((0,), (0,))),
        preferred_element_type=jnp.float32)                      # (hb, tq, Lk)

    # masked_fill_(attn_mask, -1e9)
    scores = jnp.where(mask_ref[...] != 0, jnp.float32(-1.0e9), scores)

    # numerically stable softmax over the key axis
    row_max = jnp.max(scores, axis=-1, keepdims=True)
    exps = jnp.exp(scores - row_max)
    denom = jnp.sum(exps, axis=-1, keepdims=True)
    attn = exps * pl.reciprocal(denom, approx=False)             # f32

    if attn_ref is not None:
        attn_ref[...] = attn.astype(attn_ref.dtype)

    # context = attn @ V   (bf16 MXU operands by default, f32 accumulation)
    ctx = lax.dot_general(
        attn.astype(compute_dtype), v.astype(compute_dtype),
        dimension_numbers=(((2,), (1,)), ((0,), (0,))),
        preferred_element_type=jnp.float32)                      # (hb, tq, d_v)
    ctx_ref[...] = ctx.astype(ctx_ref.dtype)


def _q_block(lq, target=512):
    """Largest divisor of Lq that is <= target and a multiple of 8 (else Lq)."""
    if lq <= target:
        return lq
    for cand in range(target, 7, -1):
        if lq % cand == 0 and cand % 8 == 0:
            return cand
    return lq


def _head_block(bh, per_head_bytes, budget=2 << 20, cap=8):
    """Batch fused (batch*head) items per grid step when per-head work is tiny,
    amortizing the ~0.35us per-grid-step overhead."""
    hb = 1
    for cand in range(1, min(bh, cap) + 1):
        if bh % cand == 0 and cand * per_head_bytes <= budget:
            hb = cand
    return hb


@functools.partial(jax.jit, static_argnames=("return_attn", "compute_dtype"))
def scaled_dot_product_attention(Q, K, V, attn_mask, *, return_attn=True,
                                 compute_dtype=jnp.bfloat16):
    """Q: [B,H,Lq,d_k], K: [B,H,Lk,d_k], V: [B,H,Lk,d_v],
    attn_mask: [B,H,Lq,Lk] (bool/int; True/nonzero == masked).
    Returns (context, attn) in f32, or just context if return_attn=False."""
    B, H, Lq, dk = Q.shape
    Lk = K.shape[2]
    dv = V.shape[3]
    BH = B * H

    # Fuse batch*heads into one axis; DMA the mask as int8.
    q = Q.reshape(BH, Lq, dk)
    k = K.reshape(BH, Lk, dk)
    v = V.reshape(BH, Lk, dv)
    mask = attn_mask.reshape(BH, Lq, Lk).astype(jnp.int8)

    tq = _q_block(Lq)
    per_head_bytes = 4 * (tq * dk + Lk * dk + Lk * dv + tq * dv + 3 * tq * Lk) + tq * Lk
    hb = _head_block(BH, per_head_bytes)

    grid = (BH // hb, Lq // tq)

    q_spec = pl.BlockSpec((hb, tq, dk), lambda g, qi: (g, qi, 0))
    k_spec = pl.BlockSpec((hb, Lk, dk), lambda g, qi: (g, 0, 0))
    v_spec = pl.BlockSpec((hb, Lk, dv), lambda g, qi: (g, 0, 0))
    m_spec = pl.BlockSpec((hb, tq, Lk), lambda g, qi: (g, qi, 0))
    ctx_spec = pl.BlockSpec((hb, tq, dv), lambda g, qi: (g, qi, 0))
    attn_spec = pl.BlockSpec((hb, tq, Lk), lambda g, qi: (g, qi, 0))

    if return_attn:
        out_shape = (jax.ShapeDtypeStruct((BH, Lq, dv), jnp.float32),
                     jax.ShapeDtypeStruct((BH, Lq, Lk), jnp.float32))
        out_specs = (ctx_spec, attn_spec)
    else:
        out_shape = jax.ShapeDtypeStruct((BH, Lq, dv), jnp.float32)
        out_specs = ctx_spec

    # VMEM budget sized to the chosen tiles (double-buffered I/O + temporaries),
    # clamped so it is valid on v5e/v6e (128 MiB) and v7x (64 MiB physical).
    step_io = hb * (tq * dk * 4 + Lk * dk * 4 + Lk * dv * 4 + tq * Lk
                    + tq * dv * 4 + (tq * Lk * 4 if return_attn else 0))
    step_tmp = hb * tq * Lk * 4 * 3
    vmem_limit = int(min(64 << 20, max(32 << 20, 2 * step_io + step_tmp + (4 << 20))))

    kernel = functools.partial(_sdpa_kernel, compute_dtype=compute_dtype)

    out = pl.pallas_call(
        kernel,
        out_shape=out_shape,
        grid_spec=pltpu.PrefetchScalarGridSpec(
            num_scalar_prefetch=0,
            grid=grid,
            in_specs=[q_spec, k_spec, v_spec, m_spec],
            out_specs=out_specs,
        ),
        compiler_params=pltpu.CompilerParams(
            dimension_semantics=("parallel", "parallel"),
            vmem_limit_bytes=vmem_limit,
        ),
    )(q, k, v, mask)

    # TODO(synk): for very long Lk (>~4k), add an Lk ("arbitrary") grid axis with
    # online-softmax (flash-style m/l/acc VMEM scratch) so VMEM is Lk-independent.

    if return_attn:
        ctx, attn = out
        return ctx.reshape(B, H, Lq, dv), attn.reshape(B, H, Lq, Lk)
    return out.reshape(B, H, Lq, dv)


def _reference(Q, K, V, attn_mask):
    scores = jnp.einsum("bhqd,bhkd->bhqk", Q, K) / math.sqrt(D_K)
    scores = jnp.where(attn_mask, -1.0e9, scores)
    attn = jax.nn.softmax(scores, axis=-1)
    ctx = jnp.einsum("bhqk,bhkd->bhqd", attn, V)
    return ctx, attn


if __name__ == "__main__":
    key = jax.random.PRNGKey(0)
    B, H, L = 2, 2, 8  # batch, n_heads, seq_len
    kq, kk, kv, km = jax.random.split(key, 4)

    Q = jax.random.normal(kq, (B, H, L, D_K), dtype=jnp.float32)
    K = jax.random.normal(kk, (B, H, L, D_K), dtype=jnp.float32)
    V = jax.random.normal(kv, (B, H, L, D_V), dtype=jnp.float32)
    # True == position to mask out (same as torch masked_fill_ semantics)
    attn_mask = jax.random.bernoulli(km, p=0.2, shape=(B, H, L, L))

    ctx_gold, attn_gold = _reference(Q, K, V, attn_mask)

    # Exact-precision path (f32 MXU operands everywhere).
    ctx32, attn32 = scaled_dot_product_attention(
        Q, K, V, attn_mask, compute_dtype=jnp.float32)
    jax.block_until_ready((ctx32, attn32))
    assert jnp.allclose(attn32, attn_gold, atol=1e-5, rtol=1e-5), "attn mismatch (f32)"
    assert jnp.allclose(ctx32, ctx_gold, atol=1e-4, rtol=1e-4), "context mismatch (f32)"

    # Default path: bf16 MXU operands for the P@V matmul (f32 accumulation);
    # attn is still exact f32.
    ctx_bf, attn_bf = scaled_dot_product_attention(Q, K, V, attn_mask)
    jax.block_until_ready((ctx_bf, attn_bf))
    assert jnp.allclose(attn_bf, attn_gold, atol=1e-5, rtol=1e-5), "attn mismatch (bf16)"
    assert jnp.allclose(ctx_bf, ctx_gold, atol=3e-2, rtol=3e-2), "context mismatch (bf16)"

    # Context-only path (skips the big Lq x Lk attention writeback).
    ctx_only = scaled_dot_product_attention(Q, K, V, attn_mask, return_attn=False)
    jax.block_until_ready(ctx_only)
    assert jnp.allclose(ctx_only, ctx_gold, atol=3e-2, rtol=3e-2), "context mismatch (ctx-only)"

    print("KERNEL_OK")
</pallas_src>

<mosaic_0001>
module attributes {stable_mosaic.version = 11 : i64} {
  func.func @_sdpa_kernel(%arg0: i32, %arg1: i32, %arg2: memref<4x8x64xf32, #tpu.memory_space<vmem>>, %arg3: memref<4x8x64xf32, #tpu.memory_space<vmem>>, %arg4: memref<4x8x64xf32, #tpu.memory_space<vmem>>, %arg5: memref<4x8x8xi8, #tpu.memory_space<vmem>>, %arg6: memref<4x8x64xf32, #tpu.memory_space<vmem>>, %arg7: memref<4x8x8xf32, #tpu.memory_space<vmem>>) attributes {dimension_semantics = [#tpu.dimension_semantics<parallel>, #tpu.dimension_semantics<parallel>], iteration_bounds = array<i64: 1, 1>, scalar_prefetch = 0 : i64, scratch_operands = 0 : i64, tpu.core_type = #tpu.core_type<tc>, window_params = [{transform_indices = @transform_0, window_bounds = array<i64: 4, 8, 64>}, {transform_indices = @transform_1, window_bounds = array<i64: 4, 8, 64>}, {transform_indices = @transform_2, window_bounds = array<i64: 4, 8, 64>}, {transform_indices = @transform_3, window_bounds = array<i64: 4, 8, 8>}, {transform_indices = @transform_4, window_bounds = array<i64: 4, 8, 64>}, {transform_indices = @transform_5, window_bounds = array<i64: 4, 8, 8>}]} {
    %c0 = arith.constant 0 : index
    %c0_0 = arith.constant 0 : index
    %c0_1 = arith.constant 0 : index
    %0 = vector.load %arg2[%c0, %c0_0, %c0_1] : memref<4x8x64xf32, #tpu.memory_space<vmem>>, vector<4x8x64xf32>
    %cst = arith.constant 1.250000e-01 : f32
    %1 = vector.broadcast %cst : f32 to vector<4x8x64xf32>
    %2 = arith.mulf %0, %1 : vector<4x8x64xf32>
    %c0_2 = arith.constant 0 : index
    %c0_3 = arith.constant 0 : index
    %c0_4 = arith.constant 0 : index
    %3 = vector.load %arg3[%c0_2, %c0_3, %c0_4] : memref<4x8x64xf32, #tpu.memory_space<vmem>>, vector<4x8x64xf32>
    %c0_5 = arith.constant 0 : index
    %c0_6 = arith.constant 0 : index
    %c0_7 = arith.constant 0 : index
    %4 = vector.load %arg4[%c0_5, %c0_6, %c0_7] : memref<4x8x64xf32, #tpu.memory_space<vmem>>, vector<4x8x64xf32>
    %cst_8 = arith.constant dense<0.000000e+00> : vector<4x8x8xf32>
    %5 = tpu.matmul %2, %3, %cst_8 {dimension_numbers = #tpu.dot_dimension_numbers<[2], [2], [1], [1], [0, 0, 0, 1, 1, 1], [0], [0]>} : vector<4x8x64xf32>, vector<4x8x64xf32>, vector<4x8x8xf32> -> vector<4x8x8xf32>
    %c0_9 = arith.constant 0 : index
    %c0_10 = arith.constant 0 : index
    %c0_11 = arith.constant 0 : index
    %6 = vector.load %arg5[%c0_9, %c0_10, %c0_11] : memref<4x8x8xi8, #tpu.memory_space<vmem>>, vector<4x8x8xi8>
    %c0_i8 = arith.constant 0 : i8
    %7 = vector.broadcast %c0_i8 : i8 to vector<4x8x8xi8>
    %8 = arith.cmpi ne, %6, %7 : vector<4x8x8xi8>
    %cst_12 = arith.constant -1.000000e+09 : f32
    %9 = vector.broadcast %cst_12 : f32 to vector<4x8x8xf32>
    %10 = arith.select %8, %9, %5 : vector<4x8x8xi1>, vector<4x8x8xf32>
    %cst_13 = arith.constant dense<0xFF800000> : vector<4x8xf32>
    %11 = vector.multi_reduction <maximumf>, %10, %cst_13 [2] : vector<4x8x8xf32> to vector<4x8xf32>
    %12 = vector.shape_cast %11 : vector<4x8xf32> to vector<4x8x1xf32>
    %13 = vector.broadcast %12 : vector<4x8x1xf32> to vector<4x8x8xf32>
    %14 = arith.subf %10, %13 : vector<4x8x8xf32>
    %15 = math.exp %14 : vector<4x8x8xf32>
    %cst_14 = arith.constant dense<0.000000e+00> : vector<4x8xf32>
    %16 = vector.multi_reduction <add>, %15, %cst_14 [2] : vector<4x8x8xf32> to vector<4x8xf32>
    %17 = vector.shape_cast %16 : vector<4x8xf32> to vector<4x8x1xf32>
    %18 = tpu.reciprocal %17 : vector<4x8x1xf32> -> vector<4x8x1xf32>
    %19 = vector.broadcast %18 : vector<4x8x1xf32> to vector<4x8x8xf32>
    %20 = arith.mulf %15, %19 : vector<4x8x8xf32>
    %c0_15 = arith.constant 0 : index
    %c0_16 = arith.constant 0 : index
    %c0_17 = arith.constant 0 : index
    %21 = vector.load %arg7[%c0_15, %c0_16, %c0_17] : memref<4x8x8xf32, #tpu.memory_space<vmem>>, vector<4x8x8xf32>
    tpu.vector_store %arg7[%c0_15, %c0_16, %c0_17], %20 {strides = array<i32>} : memref<4x8x8xf32, #tpu.memory_space<vmem>>, vector<4x8x8xf32>,
    %cst_18 = arith.constant dense<0.000000e+00> : vector<4x8x64xf32>
    %22 = tpu.matmul %20, %4, %cst_18 {dimension_numbers = #tpu.dot_dimension_numbers<[2], [1], [1], [2], [0, 0, 0, 1, 1, 2], [0], [0]>} : vector<4x8x8xf32>, vector<4x8x64xf32>, vector<4x8x64xf32> -> vector<4x8x64xf32>
    %c0_19 = arith.constant 0 : index
    %c0_20 = arith.constant 0 : index
    %c0_21 = arith.constant 0 : index
    %23 = vector.load %arg6[%c0_19, %c0_20, %c0_21] : memref<4x8x64xf32, #tpu.memory_space<vmem>>, vector<4x8x64xf32>
    tpu.vector_store %arg6[%c0_19, %c0_20, %c0_21], %22 {strides = array<i32>} : memref<4x8x64xf32, #tpu.memory_space<vmem>>, vector<4x8x64xf32>,
    return
  }
  func.func @transform_0(%arg0: i32, %arg1: i32) -> (i32, i32, i32) {
    %c0_i32 = arith.constant 0 : i32
    %c0_i32_0 = arith.constant 0 : i32
    return %arg0, %arg1, %c0_i32 : i32, i32, i32
  }
  func.func @transform_1(%arg0: i32, %arg1: i32) -> (i32, i32, i32) {
    %c0_i32 = arith.constant 0 : i32
    %c0_i32_0 = arith.constant 0 : i32
    %c0_i32_1 = arith.constant 0 : i32
    return %arg0, %c0_i32, %c0_i32_0 : i32, i32, i32
  }
  func.func @transform_2(%arg0: i32, %arg1: i32) -> (i32, i32, i32) {
    %c0_i32 = arith.constant 0 : i32
    %c0_i32_0 = arith.constant 0 : i32
    %c0_i32_1 = arith.constant 0 : i32
    return %arg0, %c0_i32, %c0_i32_0 : i32, i32, i32
  }
  func.func @transform_3(%arg0: i32, %arg1: i32) -> (i32, i32, i32) {
    %c0_i32 = arith.constant 0 : i32
    %c0_i32_0 = arith.constant 0 : i32
    return %arg0, %arg1, %c0_i32 : i32, i32, i32
  }
  func.func @transform_4(%arg0: i32, %arg1: i32) -> (i32, i32, i32) {
    %c0_i32 = arith.constant 0 : i32
    %c0_i32_0 = arith.constant 0 : i32
    return %arg0, %arg1, %c0_i32 : i32, i32, i32
  }
  func.func @transform_5(%arg0: i32, %arg1: i32) -> (i32, i32, i32) {
    %c0_i32 = arith.constant 0 : i32
    %c0_i32_0 = arith.constant 0 : i32
    return %arg0, %arg1, %c0_i32 : i32, i32, i32
  }
}

</mosaic_0001>

<bundles_post_ra>
// kernel: scaled_dot_product_attention.1
= control target key start
LH: loop header
LB: loop body
LE: loop exit
PB: predicated region body
PF: predicated region fallthrough
CT: control target
= control target key end

     0   :  { %11 = vsyncpa [#allocation3], 0  ;;  %s1139_s0 = inlined_call_operand.hbm [shape: f32[4,8,64], index: 0, kind: input, shape index: {}]   ;;  %s1140_s1 = inlined_call_operand.vmem [shape: f32[4,8,64], index: 1, kind: input, shape index: {}]   ;;  %s1141_s2 = inlined_call_operand.hbm [shape: f32[4,8,64], index: 2, kind: input, shape index: {}]   ;;  %s1142_s3 = inlined_call_operand.vmem [shape: s8[4,8,8], index: 3, kind: input, shape index: {}]   ;;  %s1143_s4 = inlined_call_operand.hbm [shape: f32[4,8,64], index: 4, kind: output, shape index: {0}]   ;;  %s1144_s5 = inlined_call_operand.hbm [shape: f32[4,8,8], index: 5, kind: output, shape index: {1}]  }
   0x1   :  { %12 = vsyncpa [#allocation6], 0 }
   0x2   :  { %13 = vsyncpa [#allocation4], 0 }
   0x3   :  { %14 = vsyncpa [#allocation9], 0  ;;  %s964_s18 = smov [#allocation2]   ;;  %s868_s22 = scalar_lea.hbm %s1139_s0, 512 }
   0x4   :  { %s20_s19 = sshll.u32 %s964_s18, 4  ;;  %p869_p0 = scmp.ne.s32.totalorder %s1139_s0, %s868_s22  ;;  %s21_s19 = int_to_ptr.vmem [resolvable:$true] %s20_s19 }
   0x5   :  { %p872_p1 = scmp.lt.u32.totalorder %s868_s22, %s1139_s0 }
   0x7   :  { %p874_p2 = pnand %p872_p1, %p869_p0 }
   0x9   :  { %877 = shalt.err (!%p874_p2)
}
   0xa   :  { %s878_s27 = scalar_lea.vmem %s21_s19, 512  ;;  %p883_p4 = scmp.lt.s32.totalorder %s21_s19, %s21_s19 }
   0xb   :  { %p879_p3 = scmp.ne.s32.totalorder %s21_s19, %s878_s27  ;;  %p884_p5 = scmp.lt.s32.totalorder %s878_s27, %s878_s27 }
   0xd   :  { %p885_p6 = por %p884_p5, %p883_p4 }
   0xf   :  { %p886_p7 = pnand %p885_p6, %p879_p3 }
  0x11   :  { %889 = shalt.err (!%p886_p7)
}
  0x12   :  { %s965_s28 = smov 128   ;;  %s966_s29 = smov 8  }
  0x13   :  { %26 = dma.hbm_to_vmem [thread:$0]  %s1139_s0, 512, %s21_s19, [#allocation3], %s965_s28, %s965_s28, %s966_s29  }
  0x14   :  { %s967_s7 = smov [#allocation5]   ;;  %s890_s11 = scalar_lea.hbm %s1141_s2, 512 }
  0x15   :  { %s34_s8 = sshll.u32 %s967_s7, 4  ;;  %p891_p8 = scmp.ne.s32.totalorder %s1141_s2, %s890_s11  ;;  %s35_s8 = int_to_ptr.vmem [resolvable:$true] %s34_s8 }
  0x16   :  { %p894_p9 = scmp.lt.u32.totalorder %s890_s11, %s1141_s2 }
  0x18   :  { %p896_p10 = pnand %p894_p9, %p891_p8 }
  0x1a   :  { %899 = shalt.err (!%p896_p10)
}
  0x1b   :  { %s900_s16 = scalar_lea.vmem %s35_s8, 512  ;;  %p905_p12 = scmp.lt.s32.totalorder %s35_s8, %s35_s8 }
  0x1c   :  { %p901_p11 = scmp.ne.s32.totalorder %s35_s8, %s900_s16  ;;  %p906_p13 = scmp.lt.s32.totalorder %s900_s16, %s900_s16 }
  0x1e   :  { %p907_p0 = por %p906_p13, %p905_p12 }
  0x20   :  { %p908_p1 = pnand %p907_p0, %p901_p11 }
  0x22   :  { %911 = shalt.err (!%p908_p1)
}
  0x23   :  { %40 = dma.hbm_to_vmem [thread:$0]  %s1141_s2, 512, %s35_s8, [#allocation6], %s965_s28, %s965_s28, %s966_s29  }
  0x24   :  { %956 = dma.done.wait [#allocation3], 512  }
  0x25   :  { %957 = vsyncadd [#allocation3], 4294966784 }
  0x26   :  { %958 = dma.done.wait [#allocation6], 512  }
  0x27   :  { %959 = vsyncadd [#allocation6], 4294966784  ;;  %v968_v0 = vmov 0.0   ;;  %vm969_vm0 = vmmov 0   ;;  %vm67_vm1 = vcmask 523264   ;;  %v59_v1 = vld [vmem:[%s1140_s1] sm:$0xff] }
  0x28   :  { %803 = vmatprep.subr.mxu0 %v968_v0  ;;  %805 = vmatprep.mubr.msk.f32.mxu0 %vm969_vm0, %v968_v0  ;;  %v51_v2 = vld [vmem:[#allocation2] sm:$0xff]  ;;  %v60_v3 = vld [vmem:[%s1140_s1 + $0x8] sm:$0xff]  ;;  %v53_v6 = vld [vmem:[#allocation2 + $0x10] sm:$0xff]  ;;  %v970_v17 = vmov 0   ;;  %vm396_vm8 = vcmask 64512  }
  0x29   :  { %808 = vmatprep.subr.mxu1 %v968_v0  ;;  %810 = vmatprep.mubr.msk.f32.mxu1 %vm969_vm0, %v968_v0  ;;  %v55_v4 = vmul.f32 0.125, %v51_v2  ;;  %v52_v5 = vld [vmem:[#allocation2 + $0x8] sm:$0xff]  ;;  %v61_v7 = vld [vmem:[%s1140_s1 + $0x10] sm:$0xff]  ;;  %v54_v9 = vld [vmem:[#allocation2 + $0x18] sm:$0xff]  ;;  %v57_v11 = vmul.f32 0.125, %v53_v6 }
  0x2a   :  { %804 = vmatpush3.xpose.msk.msra.mxu0 %vm67_vm1, %v59_v1  ;;  %809 = vmatpush3.xpose.msk.msra.mxu1 %vm67_vm1, %v60_v3  ;;  %v56_v8 = vmul.f32 0.125, %v52_v5  ;;  %v62_v10 = vld [vmem:[%s1140_s1 + $0x18] sm:$0xff]  ;;  %v58_v12 = vmul.f32 0.125, %v54_v9  ;;  %v372_v13 = vld [vmem:[%s1142_s3] sm:$0x3]  ;;  %v64_v63 = vld [vmem:[#allocation5 + $0x8] sm:$0xff] }
  0x2b   :  { %813 = vmatprep.subr.mxu0 %v968_v0  ;;  %818 = vmatprep.subr.mxu1 %v968_v0  ;;  %v373_v14 = vld [vmem:[%s1142_s3 + $0x2] sm:$0x3]  ;;  %vm376_vm2 = vnez %v372_v13  ;;  %v374_v15 = vld [vmem:[%s1142_s3 + $0x4] sm:$0x3]  ;;  %v375_v16 = vld [vmem:[%s1142_s3 + $0x6] sm:$0x3] }
  0x2c   :  { %vm377_vm3 = vnez %v373_v14  ;;  %v380_v18 = vsel %vm376_vm2, 16843009, %v970_v17  ;;  %vm378_vm4 = vnez %v374_v15  ;;  %vm379_vm5 = vnez %v375_v16  ;;  %v63_v62 = vld [vmem:[#allocation5] sm:$0xff]  ;;  %s971_s3 = smov [#allocation8]  }
  0x2d   :  { %806 = vmatmul.mubr.msk.f32.vlgmr.msra.gmra.mrb[0].mxu0 %vm67_vm1, %v55_v4  ;;  %811 = vmatmul.mubr.msk.f32.vlgmr.msra.gmra.mrb[0].mxu1 %vm67_vm1, %v56_v8  ;;  %v381_v19 = vsel %vm377_vm3, 16843009, %v970_v17  ;;  %v384_v20 = vunpack.c.0.s8 %v380_v18  ;;  %v382_v22 = vsel %vm378_vm4, 16843009, %v970_v17  ;;  %v383_v23 = vsel %vm379_vm5, 16843009, %v970_v17 }
  0x2e   :  { %814 = vmatpush3.xpose.msk.msra.mxu0 %vm67_vm1, %v61_v7  ;;  %815 = vmatprep.mubr.msk.f32.mxu0 %vm969_vm0, %v968_v0  ;;  %v385_v21 = vunpack.c.0.s8 %v381_v19  ;;  %v386_v24 = vunpack.c.0.s8 %v382_v22  ;;  %v387_v25 = vunpack.c.0.s8 %v383_v23  ;;  %v65_v7 = vld [vmem:[#allocation5 + $0x10] sm:$0xff]  ;;  %s758_s9 = sshll.u32 %s971_s3, 4  ;;  %s759_s9 = int_to_ptr.vmem [resolvable:$true] %s758_s9 }
  0x2f   :  { %819 = vmatpush3.xpose.msk.msra.mxu1 %vm67_vm1, %v62_v10  ;;  %820 = vmatprep.mubr.msk.f32.mxu1 %vm969_vm0, %v968_v0  ;;  %vm388_vm6 = vcmp.ne.s32.totalorder %v384_v20, 0  ;;  %s912_s10 = scalar_lea.vmem %s759_s9, 512  ;;  %p917_p3 = scmp.lt.s32.totalorder %s759_s9, %s759_s9 }
  0x30   :  { %823 = vmatprep.subr.mxu0 %v968_v0  ;;  %828 = vmatprep.subr.mxu1 %v968_v0  ;;  %vm389_vm7 = vcmp.ne.s32.totalorder %v385_v21, 0  ;;  %vm390_vm9 = vcmp.ne.s32.totalorder %v386_v24, 0  ;;  %vm391_vm10 = vcmp.ne.s32.totalorder %v387_v25, 0  ;;  %p913_p2 = scmp.ne.s32.totalorder %s759_s9, %s912_s10  ;;  %p918_p4 = scmp.lt.s32.totalorder %s912_s10, %s912_s10 }
  0x31   :  { %816 = vmatmul.mubr.msk.f32.vlgmr.msra.gmra.mrb[2].mxu0 %vm67_vm1, %v57_v11  ;;  %v66_v11 = vld [vmem:[#allocation5 + $0x18] sm:$0xff] }
  0x32   :  { %821 = vmatmul.mubr.msk.f32.vlgmr.msra.gmra.mrb[2].mxu1 %vm67_vm1, %v58_v12  ;;  %825 = vmatprep.mubr.msk.f32.mxu0 %vm969_vm0, %v968_v0  ;;  %p919_p5 = por %p918_p4, %p917_p3 }
  0x33   :  { %830 = vmatprep.mubr.msk.f32.mxu1 %vm969_vm0, %v968_v0  ;;  %824 = vmatpush3.msra.mxu0 %v63_v62 }
  0x34   :  { %833 = vmatprep.subr.mxu0 %v968_v0  ;;  %829 = vmatpush3.msra.mxu1 %v64_v63  ;;  %p920_p6 = pnand %p919_p5, %p913_p2 }
  0x35   :  { %838 = vmatprep.subr.mxu1 %v968_v0 }
 0x100   :  { %v140_v26 = vpop.f32.mrb[0].mxu0  ;;  %v216_v27 = vpop.f32.mrb[0].mxu1 }
 0x101   :  { %v392_v28 = vsel %vm388_vm6, -1e+09, %v140_v26  ;;  %v807_v29 = vpop.f32.mrb[1].mxu0  ;;  %v393_v30 = vsel %vm389_vm7, -1e+09, %v216_v27  ;;  %v812_v31 = vpop.f32.mrb[1].mxu1 }
 0x102   :  { %v397_v32 = vsel %vm396_vm8, %v392_v28, -inf  ;;  %v400_v34 = vsel %vm396_vm8, %v393_v30, -inf }
 0x103   :  { %398 = vmax.xlane.f32.xlu0 %v397_v32 }
 0x104   :  { %v292_v33 = vpop.f32.mrb[2].mxu0 }
 0x105   :  { %v394_v35 = vsel %vm390_vm9, -1e+09, %v292_v33  ;;  %v817_v36 = vpop.f32.mrb[3].mxu0  ;;  %v368_v37 = vpop.f32.mrb[2].mxu1 }
 0x106   :  { %v403_v38 = vsel %vm396_vm8, %v394_v35, -inf  ;;  %v395_v39 = vsel %vm391_vm10, -1e+09, %v368_v37  ;;  %v822_v40 = vpop.f32.mrb[3].mxu1 }
 0x107   :  { %401 = vmax.xlane.f32.xlu0 %v400_v34  ;;  %404 = vmax.xlane.f32.xlu1 %v403_v38  ;;  %v406_v41 = vsel %vm396_vm8, %v395_v39, -inf }
 0x10b   :  { %407 = vmax.xlane.f32.xlu1 %v406_v41 }
 0x190   :  { %v399_v42 = vpop.xlane.xlu0 %398 }
 0x191   :  { %v409_v43 = vsub.f32 %v392_v28, %v399_v42 }
 0x193   :  { %v413_v44 = vmul.f32 1.442695, %v409_v43 }
 0x194   :  { %v402_v45 = vpop.xlane.xlu0 %401  ;;  %v405_v46 = vpop.xlane.xlu1 %404 }
 0x195   :  { %852 = vpow2.f32 %v413_v44  ;;  %v410_v47 = vsub.f32 %v393_v30, %v402_v45  ;;  %v411_v48 = vsub.f32 %v394_v35, %v405_v46 }
 0x197   :  { %v415_v49 = vmul.f32 1.442695, %v410_v47  ;;  %v417_v50 = vmul.f32 1.442695, %v411_v48 }
 0x198   :  { %v408_v51 = vpop.xlane.xlu1 %407 }
 0x199   :  { %854 = vpow2.f32 %v415_v49  ;;  %v412_v52 = vsub.f32 %v395_v39, %v408_v51 }
 0x19a   :  { %856 = vpow2.f32 %v417_v50 }
 0x19b   :  { %v419_v53 = vmul.f32 1.442695, %v412_v52 }
 0x19d   :  { %858 = vpow2.f32 %v419_v53 }
 0x19f   :  { %v853_v54 = vpop.eup %852 }
 0x1a0   :  { %v421_v55 = vsel %vm396_vm8, %v853_v54, 0.0 }
 0x1a1   :  { %422 = vadd.xlane.f32.xlu0 %v421_v55 }
 0x1a3   :  { %v855_v56 = vpop.eup %854 }
 0x1a4   :  { %v857_v57 = vpop.eup %856  ;;  %v424_v58 = vsel %vm396_vm8, %v855_v56, 0.0 }
 0x1a5   :  { %425 = vadd.xlane.f32.xlu1 %v424_v58  ;;  %v427_v59 = vsel %vm396_vm8, %v857_v57, 0.0 }
 0x1a6   :  { %428 = vadd.xlane.f32.xlu0 %v427_v59 }
 0x1a7   :  { %v859_v60 = vpop.eup %858 }
 0x1a8   :  { %v430_v61 = vsel %vm396_vm8, %v859_v60, 0.0 }
 0x1a9   :  { %431 = vadd.xlane.f32.xlu1 %v430_v61 }
 0x22e   :  { %v423_v1 = vpop.xlane.xlu0 %422 }
 0x22f   :  { %860 = vrcp.f32 %v423_v1 }
 0x232   :  { %v426_v2 = vpop.xlane.xlu1 %425 }
 0x233   :  { %v429_v3 = vpop.xlane.xlu0 %428  ;;  %862 = vrcp.f32 %v426_v2 }
 0x234   :  { %864 = vrcp.f32 %v429_v3 }
 0x236   :  { %v432_v4 = vpop.xlane.xlu1 %431 }
 0x237   :  { %866 = vrcp.f32 %v432_v4 }
 0x239   :  { %v861_v5 = vpop.eup %860 }
 0x23a   :  { %v437_v6 = vmul.f32 %v861_v5, %v853_v54 }
 0x23c   :  { %441 = vst.msk [vmem:[#allocation8] sm:$0xff] %vm396_vm8, %v437_v6  ;;  %826 = vmatmul.mubr.msk.f32.vlgmr.msra.gmra.mrb[4].mxu0 %vm396_vm8, %v437_v6 }
 0x23d   :  { %v863_v8 = vpop.eup %862  ;;  %834 = vmatpush3.msra.mxu0 %v65_v7  ;;  %835 = vmatprep.mubr.msk.f32.mxu0 %vm969_vm0, %v968_v0 }
 0x23e   :  { %v865_v9 = vpop.eup %864  ;;  %v438_v10 = vmul.f32 %v863_v8, %v855_v56 }
 0x23f   :  { %v439_v12 = vmul.f32 %v865_v9, %v857_v57 }
 0x240   :  { %442 = vst.msk [vmem:[#allocation8 + $0x8] sm:$0xff] %vm396_vm8, %v438_v10  ;;  %831 = vmatmul.mubr.msk.f32.vlgmr.msra.gmra.mrb[4].mxu1 %vm396_vm8, %v438_v10 }
 0x241   :  { %v867_v13 = vpop.eup %866  ;;  %443 = vst.msk [vmem:[#allocation8 + $0x10] sm:$0xff] %vm396_vm8, %v439_v12  ;;  %836 = vmatmul.mubr.msk.f32.vlgmr.msra.gmra.mrb[6].mxu0 %vm396_vm8, %v439_v12  ;;  %839 = vmatpush3.msra.mxu1 %v66_v11 }
 0x242   :  { %v440_v14 = vmul.f32 %v867_v13, %v859_v60  ;;  %840 = vmatprep.mubr.msk.f32.mxu1 %vm969_vm0, %v968_v0 }
 0x244   :  { %444 = vst.msk [vmem:[#allocation8 + $0x18] sm:$0xff] %vm396_vm8, %v440_v14  ;;  %841 = vmatmul.mubr.msk.f32.vlgmr.msra.gmra.mrb[6].mxu1 %vm396_vm8, %v440_v14 }
 0x245   :  { %923 = shalt.err (!%p920_p6)
}
 0x246   :  { %s924_s13 = scalar_lea.hbm %s1144_s5, 512 }
 0x247   :  { %p925_p7 = scmp.ne.s32.totalorder %s1144_s5, %s924_s13  ;;  %p928_p8 = scmp.lt.u32.totalorder %s924_s13, %s1144_s5 }
 0x249   :  { %p930_p9 = pnand %p928_p8, %p925_p7 }
 0x24b   :  { %933 = shalt.err (!%p930_p9)
}
 0x24c   :  { %764 = dma.vmem_to_hbm [thread:$0]  %s759_s9, 512, %s1144_s5, [#allocation9], %s965_s28, %s965_s28, %s966_s29  }
 0x24d   :  { %s972_s19 = smov [#allocation7]  }
 0x24e   :  { %s746_s2 = sshll.u32 %s972_s19, 4  ;;  %s747_s2 = int_to_ptr.vmem [resolvable:$true] %s746_s2 }
 0x24f   :  { %s934_s5 = scalar_lea.vmem %s747_s2, 512  ;;  %p939_p11 = scmp.lt.s32.totalorder %s747_s2, %s747_s2 }
 0x250   :  { %p935_p10 = scmp.ne.s32.totalorder %s747_s2, %s934_s5  ;;  %p940_p12 = scmp.lt.s32.totalorder %s934_s5, %s934_s5 }
 0x252   :  { %p941_p13 = por %p940_p12, %p939_p11 }
 0x254   :  { %p942_p0 = pnand %p941_p13, %p935_p10 }
 0x30f   :  { %v514_v0 = vpop.f32.mrb[4].mxu0 }
 0x310   :  { %737 = vst.msk [vmem:[#allocation7] sm:$0xff] %vm67_vm1, %v514_v0  ;;  %v827_v15 = vpop.f32.mrb[5].mxu0 }
 0x313   :  { %v587_v16 = vpop.f32.mrb[4].mxu1 }
 0x314   :  { %738 = vst.msk [vmem:[#allocation7 + $0x8] sm:$0xff] %vm67_vm1, %v587_v16  ;;  %v660_v17 = vpop.f32.mrb[6].mxu0  ;;  %v832_v18 = vpop.f32.mrb[5].mxu1 }
 0x315   :  { %739 = vst.msk [vmem:[#allocation7 + $0x10] sm:$0xff] %vm67_vm1, %v660_v17  ;;  %v837_v19 = vpop.f32.mrb[7].mxu0 }
 0x317   :  { %v733_v20 = vpop.f32.mrb[6].mxu1 }
 0x318   :  { %740 = vst.msk [vmem:[#allocation7 + $0x18] sm:$0xff] %vm67_vm1, %v733_v20  ;;  %v842_v21 = vpop.f32.mrb[7].mxu1 }
 0x319   :  { %945 = shalt.err (!%p942_p0)
}
 0x31a   :  { %s946_s22 = scalar_lea.hbm %s1143_s4, 512 }
 0x31b   :  { %p947_p1 = scmp.ne.s32.totalorder %s1143_s4, %s946_s22  ;;  %p950_p2 = scmp.lt.u32.totalorder %s946_s22, %s1143_s4 }
 0x31d   :  { %p952_p3 = pnand %p950_p2, %p947_p1 }
 0x31f   :  { %955 = shalt.err (!%p952_p3)
}
 0x320   :  { %752 = dma.vmem_to_hbm [thread:$0]  %s747_s2, 512, %s1143_s4, [#allocation4], %s965_s28, %s965_s28, %s966_s29  }
 0x321   :  { %960 = dma.done.wait [#allocation4], 512  }
 0x322   :  { %961 = vsyncadd [#allocation4], 4294966784 }
 0x323   :  { %962 = dma.done.wait [#allocation9], 512  }
 0x324   :  { %963 = vsyncadd [#allocation9], 4294966784 }
 0x325   :  { %771 = vsyncpa [#allocation3], 1 }
 0x326   :  { %772 = vsyncpa [#allocation6], 1 }
 0x327   :  { %773 = vsyncpa [#allocation4], 1 }
 0x328   :  { %774 = vsyncpa [#allocation9], 1 }

</bundles_post_ra>
